<compile_context>
chip_gen: v6e
topology: v6e:2x2x1
jax: 0.10.0
libtpu: 0.0.40
codegen_flags: <defaults>
</compile_context>

<pallas_src>
import jax
import jax.numpy as jnp
from jax import lax
from jax.experimental import pallas as pl
from jax.experimental.pallas import tpu as pltpu

BN_EPS = 1e-5
LANE = 128


def _classification_branch_kernel(x_ref, w_ref, out_ref, max_acc):
    # x_ref:   (N, TC, THW)  input dtype  (NCHW view: C on sublanes, HW on lanes)
    # w_ref:   (TC, K_pad)   weight dtype (gamma-folded, transposed, zero-padded)
    # out_ref: (1, N, K_pad) f32          (per-C-tile partial logits)
    # max_acc: (N, TC)       input dtype  VMEM scratch (running spatial max)
    hw_i = pl.program_id(1)
    n_hw = pl.num_programs(1)

    @pl.when(hw_i == 0)
    def _init():
        max_acc[...] = jnp.full_like(max_acc, -jnp.inf)

    # AdaptiveMaxPool2d(1): running max over this spatial tile (XLU lane reduce;
    # free slot -- the kernel is HBM-bandwidth bound).
    max_acc[...] = jnp.maximum(max_acc[...], jnp.max(x_ref[...], axis=-1))

    # Per-C-tile epilogue once the spatial sweep for this channel slice is done.
    @pl.when(hw_i == n_hw - 1)
    def _epilogue():
        pooled = jnp.maximum(max_acc[...], 0.0).astype(jnp.float32)       # ReLU
        # BatchNorm1d, training-mode batch statistics (exact per channel slice,
        # channels are independent).  gamma is folded into w_ref; beta (frozen
        # at zero by the module) is handled wrapper-side.
        mean = jnp.mean(pooled, axis=0, keepdims=True)                    # (1, TC)
        centered = pooled - mean
        var = jnp.mean(centered * centered, axis=0, keepdims=True)        # biased
        xhat = centered * lax.rsqrt(var + BN_EPS)                         # (N, TC)
        # Linear (no bias): this channel slice's partial logits.
        out_ref[0] = jnp.dot(xhat, w_ref[...],
                             preferred_element_type=jnp.float32)


def _vmem_budget_bytes():
    """~70% of physical VMEM (v5e/v6e: 128 MiB -> ~90 MiB; v7x: 64 MiB -> ~45 MiB)."""
    cap = 64 << 20  # v7x-safe fallback
    try:
        cap = int(pltpu.get_tpu_info().vmem_capacity_bytes)
    except Exception:
        pass
    return min(int(cap * 0.70), 96 << 20)


def _divisor_tiles(total, step):
    """Candidate tile sizes: `total` itself (always layout-legal) plus every
    multiple of `step` that divides `total`, descending."""
    cands = [total]
    t = (total // step) * step
    while t >= step:
        if t != total and total % t == 0:
            cands.append(t)
        t -= step
    return cands


def _pick_tiles(N, C, HW, k_pad, x_itemsize, w_itemsize, vmem_budget,
                x_block_target):
    """Largest (c_tile, hw_tile) whose double-buffered blocks fit the budget."""
    c_cands = _divisor_tiles(C, 8)        # sublane axis: multiple of 8 (or full C)
    hw_cands = _divisor_tiles(HW, LANE)   # lane axis: multiple of 128 (or full HW)

    def vmem_bytes(c_t, hw_t):
        x_block = N * c_t * hw_t * x_itemsize
        w_block = c_t * k_pad * w_itemsize
        out_block = N * k_pad * 4
        scratch = N * c_t * x_itemsize
        return 2 * (x_block + w_block + out_block) + scratch

    for c_t in c_cands:
        for hw_t in hw_cands:
            if (N * c_t * hw_t * x_itemsize <= x_block_target
                    and vmem_bytes(c_t, hw_t) <= vmem_budget):
                return c_t, hw_t
    return c_cands[-1], hw_cands[-1]


def classification_branch_forward(x_nchw, bn_weight, bn_bias, linear_weight,
                                  endpoints, *, hw_tile=None, c_tile=None,
                                  weight_dtype=jnp.float32,
                                  split_c_for_megacore=True):
    """x_nchw: (N, C, H, W); linear_weight: (num_classes, C) as in nn.Linear."""
    N, C, H, W = x_nchw.shape
    K = linear_weight.shape[0]
    HW = H * W

    # Zero-cost view: consume NCHW directly, no HBM transpose.
    x3d = x_nchw.reshape(N, C, HW)
    x_dtype = x3d.dtype

    # Lane-dense classifier output: pad num_classes to a multiple of 128 (exact:
    # padded weight columns are zero; padded logits sliced off below).
    k_pad = max(LANE, pl.cdiv(K, LANE) * LANE)

    # Fold BN gamma into the transposed classifier weight:
    #   (xhat * gamma) @ W^T == xhat @ (gamma[:, None] * W^T)
    w_scaled = (jnp.transpose(linear_weight).astype(jnp.float32)
                * bn_weight.astype(jnp.float32)[:, None])                 # (C, K)
    w_scaled = jnp.pad(w_scaled, ((0, 0), (0, k_pad - K))).astype(weight_dtype)
    w_itemsize = jnp.dtype(weight_dtype).itemsize

    vmem_budget = _vmem_budget_bytes()
    x_block_target = min(16 << 20, vmem_budget // 6)   # multi-MiB streaming blocks

    auto_c, auto_hw = _pick_tiles(N, C, HW, k_pad, x_dtype.itemsize,
                                  w_itemsize, vmem_budget, x_block_target)
    if c_tile is None:
        c_tile = auto_c
        # Give v7x's second TensorCore work: split the (parallel) channel axis
        # into >= 2 tiles when cheap (single-TC cost: one extra ~0.35us step).
        if split_c_for_megacore and c_tile == C and C % 16 == 0:
            c_tile = C // 2
    if hw_tile is None:
        hw_tile = auto_hw

    assert C % c_tile == 0 and (c_tile % 8 == 0 or c_tile == C)
    assert HW % hw_tile == 0 and (hw_tile % LANE == 0 or hw_tile == HW)

    c_tiles = C // c_tile
    grid = (c_tiles, HW // hw_tile)

    # Scoped-VMEM limit tracks actual double-buffered usage + headroom.
    x_block = N * c_tile * hw_tile * x_dtype.itemsize
    w_block = c_tile * k_pad * w_itemsize
    out_block = N * k_pad * 4
    est_vmem = (2 * (x_block + w_block + out_block)
                + N * c_tile * x_dtype.itemsize)
    vmem_limit = int(min(max(est_vmem + (2 << 20), 8 << 20), 100 << 20))

    cost = pl.CostEstimate(
        flops=int(N * C * HW + 2 * N * C * k_pad + 8 * N * C),
        transcendentals=int(C),
        bytes_accessed=int(N * C * HW * x_dtype.itemsize
                           + C * k_pad * w_itemsize
                           + c_tiles * N * k_pad * 4),
    )

    grid_spec = pltpu.PrefetchScalarGridSpec(
        num_scalar_prefetch=0,
        grid=grid,
        in_specs=[
            pl.BlockSpec((N, c_tile, hw_tile), lambda c, h: (0, c, h)),
            pl.BlockSpec((c_tile, k_pad), lambda c, h: (c, 0)),
        ],
        out_specs=pl.BlockSpec((1, N, k_pad), lambda c, h: (c, 0, 0)),
        scratch_shapes=[
            pltpu.VMEM((N, c_tile), x_dtype),   # running spatial max
        ],
    )

    partials = pl.pallas_call(
        _classification_branch_kernel,
        out_shape=jax.ShapeDtypeStruct((c_tiles, N, k_pad), jnp.float32),
        grid_spec=grid_spec,
        compiler_params=pltpu.CompilerParams(
            # C axis: independent partial logits -> parallel (v7x 2-TC sharding).
            # HW axis: running-max reduction into scratch -> arbitrary.
            dimension_semantics=("parallel", "arbitrary"),
            vmem_limit_bytes=vmem_limit,
        ),
        cost_estimate=cost,
    )(x3d, w_scaled)

    logits = partials[0] if c_tiles == 1 else jnp.sum(partials, axis=0)
    # BN beta contributes a data-independent bias to the logits (the module
    # freezes beta at zero, so this is normally a no-op); cheap wrapper add.
    beta_bias = linear_weight.astype(jnp.float32) @ bn_bias.astype(jnp.float32)
    logits = logits[:, :K] + beta_bias[None, :]
    endpoints['softmax'] = [logits]
    return endpoints


def create_endpoints():
    return {'softmax': None}


def _reference_forward(x_nchw, bn_weight, bn_bias, linear_weight):
    """Pure-JAX reference with identical semantics (for the correctness check)."""
    N, C, H, W = x_nchw.shape
    pooled = jnp.max(x_nchw.reshape(N, C, H * W).astype(jnp.float32), axis=-1)
    pooled = jnp.maximum(pooled, 0.0)
    mean = jnp.mean(pooled, axis=0, keepdims=True)
    var = jnp.mean((pooled - mean) ** 2, axis=0, keepdims=True)
    xhat = (pooled - mean) / jnp.sqrt(var + BN_EPS)
    y = xhat * bn_weight[None, :] + bn_bias[None, :]
    return y @ linear_weight.astype(jnp.float32).T


if __name__ == "__main__":
    # Small, deterministic configuration consistent with the module.
    N, C, H, W = 2, 4, 16, 16          # batch, input_dim (channels), spatial
    num_classes = 8

    key = jax.random.PRNGKey(0)
    k_x, k_bn, k_lin = jax.random.split(key, 3)

    # Input activation map (NCHW, as PyTorch conv features).
    x = jax.random.normal(k_x, (N, C, H, W), dtype=jnp.float32)

    # weights_init_kaiming on BatchNorm1d: weight ~ N(1.0, 0.02), bias = 0
    # (bias is also requires_grad_(False) in the module -> stays zero).
    bn_weight = 1.0 + 0.02 * jax.random.normal(k_bn, (C,), dtype=jnp.float32)
    bn_bias = jnp.zeros((C,), dtype=jnp.float32)

    # weights_init_classifier on Linear: weight ~ N(0, 0.001), no bias.
    linear_weight = 0.001 * jax.random.normal(
        k_lin, (num_classes, C), dtype=jnp.float32)

    endpoints = create_endpoints()
    # hw_tile=128 -> 2 pipelined spatial steps even at this tiny demo shape.
    endpoints = classification_branch_forward(
        x, bn_weight, bn_bias, linear_weight, endpoints, hw_tile=128)

    logits = endpoints['softmax'][0]
    jax.block_until_ready(logits)
    assert logits.shape == (N, num_classes)

    ref = _reference_forward(x, bn_weight, bn_bias, linear_weight)
    max_err = float(jnp.max(jnp.abs(logits - ref)))
    assert jnp.allclose(logits, ref, rtol=1e-4, atol=1e-5), max_err
    print("KERNEL_OK")
</pallas_src>

<mosaic_0001>
module attributes {stable_mosaic.version = 11 : i64} {
  func.func @_classification_branch_kernel(%arg0: i32, %arg1: i32, %arg2: memref<2x4x128xf32, #tpu.memory_space<vmem>>, %arg3: memref<4x128xf32, #tpu.memory_space<vmem>>, %arg4: memref<1x2x128xf32, #tpu.memory_space<vmem>>, %arg5: memref<2x4xf32, #tpu.memory_space<vmem>>) attributes {dimension_semantics = [#tpu.dimension_semantics<parallel>, #tpu.dimension_semantics<arbitrary>], iteration_bounds = array<i64: 1, 2>, scalar_prefetch = 0 : i64, scratch_operands = 1 : i64, tpu.core_type = #tpu.core_type<tc>, window_params = [{transform_indices = @transform_0, window_bounds = array<i64: 2, 4, 128>}, {transform_indices = @transform_1, window_bounds = array<i64: 4, 128>}, {transform_indices = @transform_2, window_bounds = array<i64: 1, 2, 128>}]} {
    %c0_i32 = arith.constant 0 : i32
    %0 = arith.cmpi eq, %arg1, %c0_i32 : i32
    %1 = arith.extui %0 : i1 to i32
    %c0_i32_0 = arith.constant 0 : i32
    %2 = arith.cmpi ne, %1, %c0_i32_0 : i32
    scf.if %2 {
      %cst_8 = arith.constant 0xFF800000 : f32
      %11 = vector.broadcast %cst_8 : f32 to vector<2x4xf32>
      %c0_9 = arith.constant 0 : index
      %c0_10 = arith.constant 0 : index
      %12 = vector.load %arg5[%c0_9, %c0_10] : memref<2x4xf32, #tpu.memory_space<vmem>>, vector<2x4xf32>
      tpu.vector_store %arg5[%c0_9, %c0_10], %11 {strides = array<i32>} : memref<2x4xf32, #tpu.memory_space<vmem>>, vector<2x4xf32>,
    } else {
    }
    %c0 = arith.constant 0 : index
    %c0_1 = arith.constant 0 : index
    %3 = vector.load %arg5[%c0, %c0_1] : memref<2x4xf32, #tpu.memory_space<vmem>>, vector<2x4xf32>
    %c0_2 = arith.constant 0 : index
    %c0_3 = arith.constant 0 : index
    %c0_4 = arith.constant 0 : index
    %4 = vector.load %arg2[%c0_2, %c0_3, %c0_4] : memref<2x4x128xf32, #tpu.memory_space<vmem>>, vector<2x4x128xf32>
    %cst = arith.constant dense<0xFF800000> : vector<2x4xf32>
    %5 = vector.multi_reduction <maximumf>, %4, %cst [2] : vector<2x4x128xf32> to vector<2x4xf32>
    %6 = arith.maximumf %3, %5 : vector<2x4xf32>
    %c0_5 = arith.constant 0 : index
    %c0_6 = arith.constant 0 : index
    %7 = vector.load %arg5[%c0_5, %c0_6] : memref<2x4xf32, #tpu.memory_space<vmem>>, vector<2x4xf32>
    tpu.vector_store %arg5[%c0_5, %c0_6], %6 {strides = array<i32>} : memref<2x4xf32, #tpu.memory_space<vmem>>, vector<2x4xf32>,
    %c1_i32 = arith.constant 1 : i32
    %8 = arith.cmpi eq, %arg1, %c1_i32 : i32
    %9 = arith.extui %8 : i1 to i32
    %c0_i32_7 = arith.constant 0 : i32
    %10 = arith.cmpi ne, %9, %c0_i32_7 : i32
    scf.if %10 {
      %c0_8 = arith.constant 0 : index
      %c0_9 = arith.constant 0 : index
      %11 = vector.load %arg5[%c0_8, %c0_9] : memref<2x4xf32, #tpu.memory_space<vmem>>, vector<2x4xf32>
      %cst_10 = arith.constant 0.000000e+00 : f32
      %12 = vector.broadcast %cst_10 : f32 to vector<2x4xf32>
      %13 = arith.maximumf %11, %12 : vector<2x4xf32>
      %cst_11 = arith.constant dense<0.000000e+00> : vector<4xf32>
      %14 = vector.multi_reduction <add>, %13, %cst_11 [0] : vector<2x4xf32> to vector<4xf32>
      %15 = vector.shape_cast %14 : vector<4xf32> to vector<1x4xf32>
      %cst_12 = arith.constant 2.000000e+00 : f32
      %16 = vector.broadcast %cst_12 : f32 to vector<1x4xf32>
      %17 = arith.divf %15, %16 : vector<1x4xf32>
      %18 = vector.broadcast %17 : vector<1x4xf32> to vector<2x4xf32>
      %19 = arith.subf %13, %18 : vector<2x4xf32>
      %20 = arith.mulf %19, %19 : vector<2x4xf32>
      %cst_13 = arith.constant dense<0.000000e+00> : vector<4xf32>
      %21 = vector.multi_reduction <add>, %20, %cst_13 [0] : vector<2x4xf32> to vector<4xf32>
      %22 = vector.shape_cast %21 : vector<4xf32> to vector<1x4xf32>
      %cst_14 = arith.constant 2.000000e+00 : f32
      %23 = vector.broadcast %cst_14 : f32 to vector<1x4xf32>
      %24 = arith.divf %22, %23 : vector<1x4xf32>
      %cst_15 = arith.constant 9.99999974E-6 : f32
      %25 = vector.broadcast %cst_15 : f32 to vector<1x4xf32>
      %26 = arith.addf %24, %25 : vector<1x4xf32>
      %27 = math.rsqrt %26 : vector<1x4xf32>
      %28 = vector.broadcast %27 : vector<1x4xf32> to vector<2x4xf32>
      %29 = arith.mulf %19, %28 : vector<2x4xf32>
      %c0_16 = arith.constant 0 : index
      %c0_17 = arith.constant 0 : index
      %30 = vector.load %arg3[%c0_16, %c0_17] : memref<4x128xf32, #tpu.memory_space<vmem>>, vector<4x128xf32>
      %cst_18 = arith.constant dense<0.000000e+00> : vector<2x128xf32>
      %31 = tpu.matmul %29, %30, %cst_18 {dimension_numbers = #tpu.dot_dimension_numbers<[1], [0], [0], [1], [0, 0, 1, 1], [], []>} : vector<2x4xf32>, vector<4x128xf32>, vector<2x128xf32> -> vector<2x128xf32>
      %c0_19 = arith.constant 0 : index
      %c0_20 = arith.constant 0 : index
      %c0_21 = arith.constant 0 : index
      %32 = vector.load %arg4[%c0_19, %c0_20, %c0_21] : memref<1x2x128xf32, #tpu.memory_space<vmem>>, vector<1x2x128xf32>
      %33 = vector.shape_cast %32 : vector<1x2x128xf32> to vector<2x128xf32>
      %34 = vector.shape_cast %31 : vector<2x128xf32> to vector<1x2x128xf32>
      tpu.vector_store %arg4[%c0_19, %c0_20, %c0_21], %34 {strides = array<i32>} : memref<1x2x128xf32, #tpu.memory_space<vmem>>, vector<1x2x128xf32>,
    } else {
    }
    return
  }
  func.func @transform_0(%arg0: i32, %arg1: i32) -> (i32, i32, i32) {
    %c0_i32 = arith.constant 0 : i32
    %c0_i32_0 = arith.constant 0 : i32
    return %c0_i32, %arg0, %arg1 : i32, i32, i32
  }
  func.func @transform_1(%arg0: i32, %arg1: i32) -> (i32, i32) {
    %c0_i32 = arith.constant 0 : i32
    %c0_i32_0 = arith.constant 0 : i32
    return %arg0, %c0_i32 : i32, i32
  }
  func.func @transform_2(%arg0: i32, %arg1: i32) -> (i32, i32, i32) {
    %c0_i32 = arith.constant 0 : i32
    %c0_i32_0 = arith.constant 0 : i32
    %c0_i32_1 = arith.constant 0 : i32
    return %arg0, %c0_i32, %c0_i32_0 : i32, i32, i32
  }
}

</mosaic_0001>

<bundles_post_ra>
// kernel: tpu_custom_call.1
= control target key start
LH: loop header
LB: loop body
LE: loop exit
PB: predicated region body
PF: predicated region fallthrough
CT: control target
= control target key end

     0   :  { %7 = vsyncpa [#allocation4], 0  ;;  %s819_s0 = inlined_call_operand.hbm [shape: f32[2,4,256], index: 0, kind: input, shape index: {}]   ;;  %s820_s1 = inlined_call_operand.hbm [shape: f32[4,128], index: 1, kind: input, shape index: {}]   ;;  %s821_s2 = inlined_call_operand.hbm [shape: f32[1,2,128], index: 2, kind: output, shape index: {}]  }
   0x1   :  { %9 = vsyncpa [#allocation4 + $0x1], 0 }
   0x2   :  { %10 = vsyncpa [#allocation7], 0 }
   0x3   :  { %11 = vsyncpa [#allocation5], 0  ;;  %s682_s9 = smov 0   ;;  %s684_s10 = smov 0  }
   0x4   :  { %s686_s11 = smov 0   ;;  %s688_s12 = smov 0  }
   0x5   :  { %s690_s13 = smov 0   ;;  %s692_s14 = smov 0  }
   0x6 LB: > { %s415_s15 = sadd.s32 4294967295, %s656_s14   ;;  %s38_s16 = sadd.s32 1, %s644_s11  ;;  %s656_s14 = sphi %s692_s14, %s17_s14   ;;  %s652_s13 = sphi %s690_s13, %s835_s13   ;;  %s648_s12 = sphi %s688_s12, %s834_s12   ;;  %s644_s11 = sphi %s686_s11, %s833_s11   ;;  %s640_s10 = sphi %s684_s10, %s832_s10   ;;  %s636_s9 = sphi %s682_s9, %s831_s9  }
   0x7   : > { %p45_p0 = scmp.ne.s32.totalorder %s644_s11, %s640_s10  ;;  %p46_p1 = scmp.eq.s32.totalorder %s656_s14, 0 }
   0x8   : > { %p51_p2 = scmp.ne.s32.totalorder %s640_s10, %s636_s9  ;;  %p718_p3 = scmp.eq.s32.totalorder %s415_s15, 0 }
   0x9   : > { %p47_p4 = por %p46_p1, %p45_p0  ;;  %p416_p5 = scmp.ge.s32.totalorder %s656_s14, 1 }
   0xa   : > { %p725_p6 = por %p718_p3, %p51_p2  ;;  %p114_p7 = scmp.lt.s32.totalorder %s656_s14, 3 }
   0xb   : > { %s658_s20 = smov [#allocation6]   ;;  %p458_p10 = scmp.lt.s32.totalorder %s656_s14, 2 }
   0xc   : > { %s825_s18 = scalar_select %p725_p6, 1, 0 }
   0xd   : > { %p730_p8 = pnand %p416_p5, %p114_p7  ;;  %s129_s21 = sshll.u32 %s658_s20, 4  ;;  %s130_s21 = int_to_ptr.vmem [resolvable:$true] %s129_s21 }
   0xe   : > { %s140_s22 = sand.u32 1, %s644_s11   ;;  %p740_p12 = pnand %p458_p10, %p47_p4 }
   0xf   : > { %s826_s19 = scalar_select %p730_p8, 1, 0 }
  0x10   : > { %p449_p9 = pneg %p730_p8  ;;  %s531_s24 = scalar_lea.vmem %s130_s21, 64 }
  0x11   : > { %p532_p0 = scmp.ne.s32.totalorder %s130_s21, %s531_s24  ;;  %p539_p5 = scmp.lt.s32.totalorder %s130_s21, %s130_s21 }
  0x12   : > { %p450_p11 = pnand %p449_p9, %p718_p3  ;;  %p540_p7 = scmp.lt.s32.totalorder %s531_s24, %s531_s24 }
  0x14   : > { %p522_p13 = pneg %p450_p11  ;;  %p541_p6 = por %p540_p7, %p539_p5 }
  0x16   : > { %p534_p1 = pnand %p532_p0, %p522_p13 }
  0x18   : > { %p535_p2 = pneg %p534_p1 }
  0x1a   : > { %p542_p8 = pnand %p541_p6, %p535_p2 }
  0x1c   : > { %545 = shalt.err (!%p542_p8)
}
  0x1d   : > { %452 = dma.hbm_to_vmem [thread:$0]  (!%p450_p11), %s820_s1, 64, %s130_s21, [#allocation7]  }
  0x1e   : > { %s26_s27 = sadd.s32 1, %s652_s13  ;;  %s419_s28 = sshll.u32 %s140_s22, 3 }
  0x1f   : > { %p27_p4 = scmp.ge.s32.totalorder %s26_s27, 2  ;;  %s420_s29 = sshll.u32 %s652_s13, 6 }
  0x20   : > { %s144_s30 = scalar_lea.vmem [#allocation3], %s419_s28  ;;  %s151_s6 = scalar_lea.hbm %s819_s0, %s420_s29 }
  0x21   : > { %s152_s3 = sshll.u32 %s144_s30, 4  ;;  %s837_s27 = smov (%p27_p4, %s26_s27), 0  ;;  %s153_s3 = int_to_ptr.vmem [resolvable:$true] %s152_s3 }
  0x22   : > { %s34_s7 = ssub.s32 %s652_s13, %s837_s27  ;;  %s141_s9 = scalar_lea.sflag [#allocation4], %s140_s22 }
  0x23   : > { %p36_p6 = scmp.eq.s32.totalorder %s34_s7, 0  ;;  %p548_p8 = pneg %p740_p12 }
  0x24   : > { %s559_s20 = scalar_lea.vmem %s153_s3, 128  ;;  %s659_s21 = smov [#allocation3]  }
  0x25   : > { %s759_s8 = scalar_select %p36_p6, %s644_s11, %s38_s16  }
  0x26   : > { %p560_p9 = scmp.ne.s32.totalorder %s153_s3, %s559_s20  ;;  %s564_s24 = sshll.u32 %s659_s21, 4  ;;  %s565_s24 = int_to_ptr.vmem [resolvable:$false] %s564_s24 }
  0x27   : > { %s566_s25 = scalar_lea.vmem %s565_s24, 256  ;;  %p567_p13 = scmp.lt.s32.totalorder %s153_s3, %s565_s24 }
  0x28   : > { %p562_p10 = pnand %p560_p9, %p548_p8  ;;  %p568_p0 = scmp.lt.s32.totalorder %s566_s25, %s559_s20 }
  0x2a   : > { %p563_p11 = pneg %p562_p10  ;;  %p569_p1 = por %p568_p0, %p567_p13 }
  0x2c   : > { %p570_p2 = pnand %p569_p1, %p563_p11 }
  0x2e   : > { %573 = shalt.err (!%p570_p2)
}
  0x2f   : > { %s660_s26 = smov 128   ;;  %s661_s16 = smov 64  }
  0x30   : > { %s662_s28 = smov 4   ;;  %p828_p5 = scmp.ne.s32.totalorder %s826_s19, 0 }
  0x31   : > { %456 = dma.hbm_to_vmem [thread:$0]  (!%p740_p12), %s151_s6, 128, %s153_s3, %s141_s9, %s660_s26, %s661_s16, %s662_s28  }
  0x32   : > { %164 = sbr.rel (%p828_p5) target bundleno = 488 (0x1e8), region = 28  ;;  %s166_s22 = sand.u32 (!%p828_p5), 1, %s640_s10  }
  0x33   : > { %s422_s29 = sshll.u32 (!%p828_p5), %s166_s22, 3  ;;  %s167_s30 = scalar_lea.sflag (!%p828_p5), [#allocation4], %s166_s22 }
  0x34   : > { %s170_s4 = scalar_lea.vmem (!%p828_p5), [#allocation3], %s422_s29  ;;  %p829_p7 = scmp.ne.s32.totalorder (!%p828_p5), %s825_s18, 0 }
  0x37   : > { %623 = dma.done.wait (%p829_p7), %s167_s30, 128  }
  0x38   : > { %625 = vsyncadd (%p829_p7), %s167_s30, 4294967168 }
  0x39   : > { %627 = dma.done.wait (%p718_p3), [#allocation7], 64  }
  0x3a   : > { %629 = vsyncadd (%p718_p3), [#allocation7], 4294967232  ;;  %p424_p12 = scmp.ne.s32.totalorder %s648_s12, 0 }
  0x3c   : > { %193 = sbr.rel (%p424_p12) target bundleno = 67 (0x43), region = 40 }
  0x41   : > { %vm194_vm0 = vcmask 25600   ;;  %v663_v0 = vmov -inf  }
  0x42   : > { %195 = vst.msk [vmem:[#allocation2] sm:$0x3] %vm194_vm0, %v663_v0 }
  0x43 PF: > { %v197_v1 = vld [vmem:[%s170_s4] sm:$0xf]  ;;  %vm199_vm1 = vcmask 1043456   ;;  %v198_v2 = vld [vmem:[%s170_s4 + $0x4] sm:$0xf]  ;;  %v208_v5 = vlaneseq  ;;  %vm218_vm2 = vcmask 1041409  }
  0x44   : > { %v200_v3 = vsel %vm199_vm1, %v197_v1, -inf  ;;  %v203_v4 = vsel %vm199_vm1, %v198_v2, -inf  ;;  %vm222_vm3 = vcmask 25600   ;;  %p425_p3 = scmp.ne.s32.totalorder %s648_s12, 1 }
  0x45   : > { %201 = vmax.xlane.f32.xlu0 %v200_v3  ;;  %v209_v6 = vand.u32 127, %v208_v5  ;;  %v211_v7 = vshrl.u32 %v208_v5, 7 }
  0x47   : > { %v212_v9 = vsub.s32 %v209_v6, %v211_v7 }
  0x49   : > { %204 = vmax.xlane.f32.xlu0 %v203_v4  ;;  %v196_v12 = vld [vmem:[#allocation2] sm:$0x3] }
  0xce   : > { %v202_v8 = vpop.xlane.xlu0 %201 }
  0xcf   : > { %v213_v11 = vrot.slane %v202_v8, %v212_v9 }
  0xd2   : > { %v205_v10 = vpop.xlane.xlu0 %204 }
  0xd3   : > { %v217_v13 = vrot.slane %v205_v10, %v212_v9 }
  0xd4   : > { %227 = sbr.rel (%p425_p3) target bundleno = 473 (0x1d9), region = 44 }
  0xd5   : > { %v219_v14 = vsel %vm218_vm2, %v217_v13, %v213_v11 }
  0xd6   : > { %v221_v15 = vmax.f32 %v196_v12, %v219_v14 }
  0xd8   : > { %223 = vst.msk [vmem:[#allocation2] sm:$0x3] %vm222_vm3, %v221_v15 }
  0xd9   : > { %v252_v16 = vld [vmem:[#allocation6] sm:$0xf]  ;;  %v664_v18 = vmov 0.0   ;;  %vm665_vm4 = vmmov 0   ;;  %vm253_vm5 = vcmask 31744  }
  0xda   : > { %434 = vmatprep.subr.mxu0 %v664_v18  ;;  %436 = vmatprep.mubr.msk.f32.mxu0 %vm665_vm4, %v664_v18 }
  0xdb   : > { %435 = vmatpush3.msk.msra.mxu0 %vm199_vm1, %v252_v16 }
  0xdf   : > { %v228_v17 = vld [vmem:[#allocation2] sm:$0x3] }
  0xe0   : > { %v229_v19 = vmax.f32 %v228_v17, 0.0 }
  0xe2   : > { %v230_v20 = vsel %vm222_vm3, %v229_v19, 0.0 }
  0xe3   : > { %v231_v21 = vrot.slane %v230_v20, 4 }
  0xe5   : > { %v232_v22 = vadd.f32 %v231_v21, %v230_v20 }
  0xe7   : > { %v233_v23 = vrot.slane %v232_v22, 2 }
  0xe9   : > { %v234_v24 = vadd.f32 %v233_v23, %v232_v22 }
  0xeb   : > { %v235_v25 = vrot.slane %v234_v24, 1 }
  0xed   : > { %v236_v26 = vadd.f32 %v235_v25, %v234_v24 }
  0xef   : > { %v238_v27 = vmul.f32 0.5, %v236_v26 }
  0xf1   : > { %v239_v28 = vsub.f32 %v229_v19, %v238_v27 }
  0xf3   : > { %v240_v29 = vmul.f32 %v239_v28, %v239_v28 }
  0xf5   : > { %v241_v30 = vsel %vm222_vm3, %v240_v29, 0.0 }
  0xf6   : > { %v242_v31 = vrot.slane %v241_v30, 4 }
  0xf8   : > { %v243_v32 = vadd.f32 %v242_v31, %v241_v30 }
  0xfa   : > { %v244_v33 = vrot.slane %v243_v32, 2 }
  0xfc   : > { %v245_v34 = vadd.f32 %v244_v33, %v243_v32 }
  0xfe   : > { %v246_v35 = vrot.slane %v245_v34, 1 }
 0x100   : > { %v247_v36 = vadd.f32 %v246_v35, %v245_v34 }
 0x102   : > { %v248_v37 = vmul.f32 0.5, %v247_v36 }
 0x104   : > { %v249_v38 = vadd.f32 1e-05, %v248_v37 }
 0x106   : > { %518 = vrsqrt.f32 %v249_v38 }
 0x113   : > { %v519_v39 = vpop.eup %518 }
 0x114   : > { %v251_v40 = vmul.f32 %v519_v39, %v239_v28 }
 0x116   : > { %437 = vmatmul.mubr.msk.f32.vlgmr.msra.gmra.mxu0 %vm253_vm5, %v251_v40 }
 0x1d6   : > { %v326_v41 = vpop.f32.mrf.mxu0 }
 0x1d7   : > { %330 = vst [vmem:[#allocation8] sm:$0x3] %v326_v41 }
 0x1d8   : > { %v438_v42 = vpop.f32.mrf.mxu0 }
 0x1d9 PF: > { %p786_p4 = scmp.eq.s32.totalorder %s415_s15, 1  ;;  %s666_s17 = smov [#allocation8]  }
 0x1da   : > { %s340_s18 = sshll.u32 %s666_s17, 4  ;;  %s341_s18 = int_to_ptr.vmem [resolvable:$true] %s340_s18 }
 0x1db   : > { %s574_s19 = scalar_lea.vmem %s341_s18, 32  ;;  %p581_p10 = scmp.lt.s32.totalorder %s341_s18, %s341_s18 }
 0x1dc   : > { %p575_p6 = scmp.ne.s32.totalorder %s341_s18, %s574_s19  ;;  %p582_p11 = scmp.lt.s32.totalorder %s574_s19, %s574_s19 }
 0x1de   : > { %p576_p8 = pnand %p575_p6, %p786_p4  ;;  %p583_p13 = por %p582_p11, %p581_p10 }
 0x1e0   : > { %p577_p9 = pneg %p576_p8 }
 0x1e2   : > { %p584_p0 = pnand %p583_p13, %p577_p9 }
 0x1e4   : > { %587 = shalt.err (!%p584_p0)
}
 0x1e5   : > { %446 = dma.vmem_to_hbm [thread:$0]  (%p786_p4), %s341_s18, 32, %s821_s2, [#allocation5]  }
 0x1e6   : > { %631 = dma.done.wait (%p786_p4), [#allocation5], 32  }
 0x1e7   : > { %633 = vsyncadd (%p786_p4), [#allocation5], 4294967264 }
 0x1e8 PF: > { %s17_s14 = sadd.s32 1, %s656_s14   ;;  %s831_s9 = smov %s640_s10 }
 0x1e9   : > { %p14_p1 = scmp.ge.s32.totalorder %s17_s14, 4   ;;  %s832_s10 = smov %s644_s11 }
 0x1ea   : > { %s833_s11 = smov %s759_s8  ;;  %s834_s12 = smov %s652_s13 }
 0x1eb   : > { %s835_s13 = smov %s837_s27  ;;  %16 = sbr.rel (!%p14_p1) target bundleno = 6 (0x6), region = 79 }
 0x1f0   :  { %353 = vsyncpa [#allocation4], 1 }
 0x1f1   :  { %355 = vsyncpa [#allocation4 + $0x1], 1 }
 0x1f2   :  { %356 = vsyncpa [#allocation7], 1 }
 0x1f3   :  { %357 = vsyncpa [#allocation5], 1 }
 0x1f4   :  { %359 = vsyncpa [#allocation5 + $0x1], 1 }

</bundles_post_ra>
